<compile_context>
chip_gen: v7x
topology: tpu7x:2x2x1
jax: 0.10.0
libtpu: 0.0.40
codegen_flags: <defaults>
</compile_context>

<pallas_src>
import functools

import jax
import jax.numpy as jnp
import numpy as np
from jax.experimental import pallas as pl
from jax.experimental.pallas import tpu as pltpu


# ---------------------------------------------------------------------------
# Kernel 1: per-spatial-position partial max / sum over the N*C rows
# ---------------------------------------------------------------------------
def _reduce_kernel(x_ref, pmax_ref, psum_ref, max_sc, sum_sc, *,
                   n_rows, tile_rows, inner, needs_mask):
    p = pl.program_id(0)
    i = pl.program_id(1)

    @pl.when(i == 0)
    def _():
        max_sc[...] = jnp.full_like(max_sc, -jnp.inf)
        sum_sc[...] = jnp.zeros_like(sum_sc)

    xb = x_ref[...].astype(jnp.float32)                      # (tm, HW) f32

    if needs_mask:
        # cdiv grid: the last block may be partial, and (on odd block counts)
        # the two-core split may replay a clamped block.  Mask by global row.
        row0 = (p * inner + i) * tile_rows
        rid = row0 + jax.lax.broadcasted_iota(jnp.int32, (xb.shape[0], 1), 0)
        valid = rid < n_rows                                  # (tm, 1)
        xmax = jnp.where(valid, xb, -jnp.inf)
        xsum = jnp.where(valid, xb, 0.0)
    else:
        xmax = xb
        xsum = xb

    max_sc[...] = jnp.maximum(max_sc[...], jnp.max(xmax, axis=0, keepdims=True))
    sum_sc[...] = sum_sc[...] + jnp.sum(xsum, axis=0, keepdims=True)

    @pl.when(i == pl.num_programs(1) - 1)
    def _():
        # Output block is (8, HW) (sublane-aligned).  Max is broadcast to all 8
        # rows (neutral under the later max-reduce); the sum goes in row 0 with
        # zeros elsewhere (neutral under the later sum-reduce).
        rows = jax.lax.broadcasted_iota(jnp.int32, pmax_ref.shape, 0)
        pmax_ref[...] = jnp.broadcast_to(max_sc[...], pmax_ref.shape)
        psum_ref[...] = jnp.where(
            rows == 0, jnp.broadcast_to(sum_sc[...], psum_ref.shape), 0.0)


# ---------------------------------------------------------------------------
# Kernel 2 (tiny, runs once): combine partials + 7x7 conv (pad 3) + sigmoid
# ---------------------------------------------------------------------------
def _combine_conv_kernel(pmax_ref, psum_ref, hh_ref, ww_ref, wgt_ref, bias_ref,
                         att_ref, *, H, W, inv_count):
    HW = H * W
    max_map = jnp.max(pmax_ref[...], axis=0, keepdims=True)                # (1, HW)
    mean_map = jnp.sum(psum_ref[...], axis=0, keepdims=True) * inv_count   # (1, HW)

    hh = hh_ref[...]          # (1, HW) int32: h index of each flat position
    ww = ww_ref[...]          # (1, HW) int32: w index of each flat position

    acc = jnp.zeros((1, HW), jnp.float32) + bias_ref[0]
    # 7x7 cross-correlation with zero padding, done as masked lane-rolls on the
    # flat (1, H*W) maps.  Weight layout: wgt_ref[c*49 + dy*7 + dx], c=0 -> max
    # map, c=1 -> mean map (matches torch.cat((max, avg), dim=1)).
    for dy in range(7):
        for dx in range(7):
            oy = dy - 3
            ox = dx - 3
            shift = (-(oy * W + ox)) % HW
            if shift == 0:
                r_max, r_mean = max_map, mean_map
            else:
                r_max = pltpu.roll(max_map, shift=shift, axis=1)
                r_mean = pltpu.roll(mean_map, shift=shift, axis=1)
            k = dy * 7 + dx
            tap = wgt_ref[k] * r_max + wgt_ref[49 + k] * r_mean
            valid = ((hh >= -oy) & (hh < H - oy) &
                     (ww >= -ox) & (ww < W - ox))
            acc = acc + jnp.where(valid, tap, 0.0)

    att_ref[...] = jax.nn.sigmoid(acc)


# ---------------------------------------------------------------------------
# Kernel 3: y = x * att (att broadcast over all N*C rows)
# ---------------------------------------------------------------------------
def _scale_kernel(x_ref, att_ref, o_ref):
    xb = x_ref[...].astype(jnp.float32)                 # (tm, HW)
    o_ref[...] = (xb * att_ref[...]).astype(o_ref.dtype)


# ---------------------------------------------------------------------------
# Per-generation VMEM budgets / block-size targets (f32-working bytes / block)
# ---------------------------------------------------------------------------
def _vmem_budgets():
    try:
        kind = jax.devices()[0].device_kind.lower()
    except Exception:
        kind = ""
    mib = 1024 * 1024
    if any(v in kind for v in ("v4", "v5", "v6")):
        # 128 MiB physical VMEM: big blocks, raised scoped limit (~85% roofline).
        return 100 * mib, 16 * mib, 12 * mib
    if "v7" in kind:
        # 64 MiB physical VMEM per TensorCore: stay under it with headroom.
        return 56 * mib, 8 * mib, 6 * mib
    # Unknown backend (e.g. interpret mode / older chips): stay under defaults.
    return None, 2 * mib, 2 * mib


def _pick_row_tile(n_rows, hw, itemsize, target_f32_bytes):
    """Rows per block: sublane-aligned for the real dtype, divisor-independent."""
    sub = max(8, 32 // max(1, itemsize))          # 8 for f32, 16 for bf16, 32 for i8
    cap = max(1, target_f32_bytes // (hw * 4))    # bound the f32 working set
    if n_rows <= cap:
        return n_rows                             # single full-extent block
    tm = max(sub, (cap // sub) * sub)
    return min(tm, n_rows)


# ---------------------------------------------------------------------------
# Wrapper
# ---------------------------------------------------------------------------
def positional_attention_module(x, conv_w, conv_b):
    """x: (N, C, H, W).  conv_w: (1, 2, 7, 7), conv_b: (1,) (PyTorch layout)."""
    N, C, H, W = x.shape
    M = N * C
    HW = H * W
    itemsize = jnp.dtype(x.dtype).itemsize

    vlim, reduce_target, scale_target = _vmem_budgets()

    # NCHW -> (N*C, H*W): pure reshape, no copy, no dtype cast; H*W on lanes.
    x2d = x.reshape(M, HW)

    # --- pass 1: partial per-position max / sum ------------------------------
    tm_r = _pick_row_tile(M, HW, itemsize, reduce_target)
    nblocks = pl.cdiv(M, tm_r)
    nsplit = 2 if nblocks >= 2 else 1          # leading "parallel" axis for v7x
    inner = pl.cdiv(nblocks, nsplit)
    needs_mask = (tm_r * nblocks != M) or (nsplit * inner != nblocks)

    pmax, psum = pl.pallas_call(
        functools.partial(_reduce_kernel, n_rows=M, tile_rows=tm_r,
                          inner=inner, needs_mask=needs_mask),
        out_shape=(jax.ShapeDtypeStruct((8 * nsplit, HW), jnp.float32),
                   jax.ShapeDtypeStruct((8 * nsplit, HW), jnp.float32)),
        grid_spec=pltpu.PrefetchScalarGridSpec(
            num_scalar_prefetch=0,
            grid=(nsplit, inner),
            in_specs=[pl.BlockSpec(
                (tm_r, HW),
                lambda p, i: (jnp.minimum(p * inner + i, nblocks - 1), 0))],
            out_specs=[pl.BlockSpec((8, HW), lambda p, i: (p, 0)),
                       pl.BlockSpec((8, HW), lambda p, i: (p, 0))],
            scratch_shapes=[pltpu.VMEM((1, HW), jnp.float32),
                            pltpu.VMEM((1, HW), jnp.float32)],
        ),
        compiler_params=pltpu.CompilerParams(
            dimension_semantics=("parallel", "arbitrary"),
            vmem_limit_bytes=vlim),
    )(x2d)

    # --- pass 2 (tiny): combine partials + conv + sigmoid --------------------
    # Coordinate maps are proper inputs (NOT captured constants).
    hh = jnp.repeat(jnp.arange(H, dtype=jnp.int32), W).reshape(1, HW)
    ww = jnp.tile(jnp.arange(W, dtype=jnp.int32), H).reshape(1, HW)
    wgt_flat = conv_w.reshape(-1).astype(jnp.float32)    # (98,) = [c, ky, kx]
    bias = conv_b.reshape(-1).astype(jnp.float32)        # (1,)

    att = pl.pallas_call(
        functools.partial(_combine_conv_kernel, H=H, W=W,
                          inv_count=1.0 / float(M)),
        out_shape=jax.ShapeDtypeStruct((1, HW), jnp.float32),
        grid_spec=pltpu.PrefetchScalarGridSpec(
            num_scalar_prefetch=0,
            grid=(1,),
            in_specs=[pl.BlockSpec((8 * nsplit, HW), lambda i: (0, 0)),
                      pl.BlockSpec((8 * nsplit, HW), lambda i: (0, 0)),
                      pl.BlockSpec((1, HW), lambda i: (0, 0)),
                      pl.BlockSpec((1, HW), lambda i: (0, 0)),
                      pl.BlockSpec(memory_space=pltpu.MemorySpace.SMEM),
                      pl.BlockSpec(memory_space=pltpu.MemorySpace.SMEM)],
            out_specs=pl.BlockSpec((1, HW), lambda i: (0, 0)),
        ),
        compiler_params=pltpu.CompilerParams(
            dimension_semantics=("arbitrary",)),
    )(pmax, psum, hh, ww, wgt_flat, bias)

    # --- pass 3: y = x * att (native dtype in, native dtype out) -------------
    tm_s = _pick_row_tile(M, HW, itemsize, scale_target)
    nblk_s = pl.cdiv(M, tm_s)   # OOB rows of a partial last block are dropped

    y2d = pl.pallas_call(
        _scale_kernel,
        out_shape=jax.ShapeDtypeStruct((M, HW), x2d.dtype),
        grid_spec=pltpu.PrefetchScalarGridSpec(
            num_scalar_prefetch=0,
            grid=(nblk_s,),
            in_specs=[pl.BlockSpec((tm_s, HW), lambda i: (i, 0)),
                      pl.BlockSpec((1, HW), lambda i: (0, 0))],
            out_specs=pl.BlockSpec((tm_s, HW), lambda i: (i, 0)),
        ),
        compiler_params=pltpu.CompilerParams(
            dimension_semantics=("parallel",),
            vmem_limit_bytes=vlim),
    )(x2d, att)

    # (N*C, H*W) -> NCHW: pure reshape, no transpose, no cast.
    return y2d.reshape(N, C, H, W)


# ---------------------------------------------------------------------------
# Pure-JAX reference (for sanity check)
# ---------------------------------------------------------------------------
def _reference(x, conv_w, conv_b):
    max_x = jnp.max(x, axis=(0, 1), keepdims=True)     # (1,1,H,W)
    avg_x = jnp.mean(x, axis=(0, 1), keepdims=True)    # (1,1,H,W)
    att = jnp.concatenate([max_x, avg_x], axis=1)      # (1,2,H,W)
    att = jax.lax.conv_general_dilated(
        att, conv_w, window_strides=(1, 1), padding=((3, 3), (3, 3)),
        dimension_numbers=("NCHW", "OIHW", "NCHW"))
    att = jax.nn.sigmoid(att + conv_b.reshape(1, 1, 1, 1))
    return x * att


if __name__ == "__main__":
    # Small shapes: batch=2, channels=4, spatial=16x16
    N, C, H, W = 2, 4, 16, 16

    key = jax.random.PRNGKey(0)
    kx, kw, kb = jax.random.split(key, 3)

    x = jax.random.normal(kx, (N, C, H, W), dtype=jnp.float32)

    # PyTorch Conv2d(2, 1, 7, 7) default init bounds: 1/sqrt(fan_in)
    fan_in = 2 * 7 * 7
    bound = 1.0 / np.sqrt(fan_in)
    conv_w = jax.random.uniform(kw, (1, 2, 7, 7), jnp.float32, -bound, bound)
    conv_b = jax.random.uniform(kb, (1,), jnp.float32, -bound, bound)

    out = positional_attention_module(x, conv_w, conv_b)
    out = jax.block_until_ready(out)

    ref = _reference(x, conv_w, conv_b)
    assert out.shape == (N, C, H, W)
    np.testing.assert_allclose(np.asarray(out), np.asarray(ref), rtol=1e-5, atol=1e-5)

    print("KERNEL_OK")
</pallas_src>

<mosaic_0001>
module attributes {stable_mosaic.version = 11 : i64} {
  func.func @_reduce_kernel(%arg0: i32, %arg1: i32, %arg2: memref<8x256xf32, #tpu.memory_space<vmem>>, %arg3: memref<8x256xf32, #tpu.memory_space<vmem>>, %arg4: memref<8x256xf32, #tpu.memory_space<vmem>>, %arg5: memref<1x256xf32, #tpu.memory_space<vmem>>, %arg6: memref<1x256xf32, #tpu.memory_space<vmem>>) attributes {dimension_semantics = [#tpu.dimension_semantics<parallel>, #tpu.dimension_semantics<arbitrary>], iteration_bounds = array<i64: 1, 1>, scalar_prefetch = 0 : i64, scratch_operands = 2 : i64, tpu.core_type = #tpu.core_type<tc>, window_params = [{transform_indices = @transform_0, window_bounds = array<i64: 8, 256>}, {transform_indices = @transform_1, window_bounds = array<i64: 8, 256>}, {transform_indices = @transform_2, window_bounds = array<i64: 8, 256>}]} {
    %c0_i32 = arith.constant 0 : i32
    %0 = arith.cmpi eq, %arg1, %c0_i32 : i32
    %1 = arith.extui %0 : i1 to i32
    %c0_i32_0 = arith.constant 0 : i32
    %2 = arith.cmpi ne, %1, %c0_i32_0 : i32
    scf.if %2 {
      %cst_13 = arith.constant 0xFF800000 : f32
      %17 = vector.broadcast %cst_13 : f32 to vector<1x256xf32>
      %c0_14 = arith.constant 0 : index
      %c0_15 = arith.constant 0 : index
      %18 = vector.load %arg5[%c0_14, %c0_15] : memref<1x256xf32, #tpu.memory_space<vmem>>, vector<1x256xf32>
      tpu.vector_store %arg5[%c0_14, %c0_15], %17 {strides = array<i32>} : memref<1x256xf32, #tpu.memory_space<vmem>>, vector<1x256xf32>,
      %cst_16 = arith.constant 0.000000e+00 : f32
      %19 = vector.broadcast %cst_16 : f32 to vector<1x256xf32>
      %c0_17 = arith.constant 0 : index
      %c0_18 = arith.constant 0 : index
      %20 = vector.load %arg6[%c0_17, %c0_18] : memref<1x256xf32, #tpu.memory_space<vmem>>, vector<1x256xf32>
      tpu.vector_store %arg6[%c0_17, %c0_18], %19 {strides = array<i32>} : memref<1x256xf32, #tpu.memory_space<vmem>>, vector<1x256xf32>,
    } else {
    }
    %c0 = arith.constant 0 : index
    %c0_1 = arith.constant 0 : index
    %3 = vector.load %arg2[%c0, %c0_1] : memref<8x256xf32, #tpu.memory_space<vmem>>, vector<8x256xf32>
    %c0_2 = arith.constant 0 : index
    %c0_3 = arith.constant 0 : index
    %4 = vector.load %arg5[%c0_2, %c0_3] : memref<1x256xf32, #tpu.memory_space<vmem>>, vector<1x256xf32>
    %cst = arith.constant dense<0xFF800000> : vector<256xf32>
    %5 = vector.multi_reduction <maximumf>, %3, %cst [0] : vector<8x256xf32> to vector<256xf32>
    %6 = vector.shape_cast %5 : vector<256xf32> to vector<1x256xf32>
    %7 = arith.maximumf %4, %6 : vector<1x256xf32>
    %c0_4 = arith.constant 0 : index
    %c0_5 = arith.constant 0 : index
    %8 = vector.load %arg5[%c0_4, %c0_5] : memref<1x256xf32, #tpu.memory_space<vmem>>, vector<1x256xf32>
    tpu.vector_store %arg5[%c0_4, %c0_5], %7 {strides = array<i32>} : memref<1x256xf32, #tpu.memory_space<vmem>>, vector<1x256xf32>,
    %c0_6 = arith.constant 0 : index
    %c0_7 = arith.constant 0 : index
    %9 = vector.load %arg6[%c0_6, %c0_7] : memref<1x256xf32, #tpu.memory_space<vmem>>, vector<1x256xf32>
    %cst_8 = arith.constant dense<0.000000e+00> : vector<256xf32>
    %10 = vector.multi_reduction <add>, %3, %cst_8 [0] : vector<8x256xf32> to vector<256xf32>
    %11 = vector.shape_cast %10 : vector<256xf32> to vector<1x256xf32>
    %12 = arith.addf %9, %11 : vector<1x256xf32>
    %c0_9 = arith.constant 0 : index
    %c0_10 = arith.constant 0 : index
    %13 = vector.load %arg6[%c0_9, %c0_10] : memref<1x256xf32, #tpu.memory_space<vmem>>, vector<1x256xf32>
    tpu.vector_store %arg6[%c0_9, %c0_10], %12 {strides = array<i32>} : memref<1x256xf32, #tpu.memory_space<vmem>>, vector<1x256xf32>,
    %c0_i32_11 = arith.constant 0 : i32
    %14 = arith.cmpi eq, %arg1, %c0_i32_11 : i32
    %15 = arith.extui %14 : i1 to i32
    %c0_i32_12 = arith.constant 0 : i32
    %16 = arith.cmpi ne, %15, %c0_i32_12 : i32
    scf.if %16 {
      %17 = tpu.iota {dimensions = array<i32: 0>} : vector<8x256xi32>
      %c0_13 = arith.constant 0 : index
      %c0_14 = arith.constant 0 : index
      %18 = vector.load %arg5[%c0_13, %c0_14] : memref<1x256xf32, #tpu.memory_space<vmem>>, vector<1x256xf32>
      %19 = vector.shape_cast %18 : vector<1x256xf32> to vector<1x256xf32>
      %20 = vector.broadcast %19 : vector<1x256xf32> to vector<8x256xf32>
      %c0_15 = arith.constant 0 : index
      %c0_16 = arith.constant 0 : index
      %21 = vector.load %arg3[%c0_15, %c0_16] : memref<8x256xf32, #tpu.memory_space<vmem>>, vector<8x256xf32>
      tpu.vector_store %arg3[%c0_15, %c0_16], %20 {strides = array<i32>} : memref<8x256xf32, #tpu.memory_space<vmem>>, vector<8x256xf32>,
      %c0_i32_17 = arith.constant 0 : i32
      %22 = vector.broadcast %c0_i32_17 : i32 to vector<8x256xi32>
      %23 = arith.cmpi eq, %17, %22 : vector<8x256xi32>
      %c0_18 = arith.constant 0 : index
      %c0_19 = arith.constant 0 : index
      %24 = vector.load %arg6[%c0_18, %c0_19] : memref<1x256xf32, #tpu.memory_space<vmem>>, vector<1x256xf32>
      %25 = vector.shape_cast %24 : vector<1x256xf32> to vector<1x256xf32>
      %26 = vector.broadcast %25 : vector<1x256xf32> to vector<8x256xf32>
      %cst_20 = arith.constant 0.000000e+00 : f32
      %27 = vector.broadcast %cst_20 : f32 to vector<8x256xf32>
      %28 = arith.select %23, %26, %27 : vector<8x256xi1>, vector<8x256xf32>
      %c0_21 = arith.constant 0 : index
      %c0_22 = arith.constant 0 : index
      %29 = vector.load %arg4[%c0_21, %c0_22] : memref<8x256xf32, #tpu.memory_space<vmem>>, vector<8x256xf32>
      tpu.vector_store %arg4[%c0_21, %c0_22], %28 {strides = array<i32>} : memref<8x256xf32, #tpu.memory_space<vmem>>, vector<8x256xf32>,
    } else {
    }
    return
  }
  func.func @transform_0(%arg0: i32, %arg1: i32) -> (i32, i32) {
    %c1_i32 = arith.constant 1 : i32
    %0 = arith.muli %arg0, %c1_i32 : i32
    %1 = arith.addi %0, %arg1 : i32
    %c0_i32 = arith.constant 0 : i32
    %2 = arith.minsi %1, %c0_i32 : i32
    %c0_i32_0 = arith.constant 0 : i32
    %c0_i32_1 = arith.constant 0 : i32
    return %2, %c0_i32_0 : i32, i32
  }
  func.func @transform_1(%arg0: i32, %arg1: i32) -> (i32, i32) {
    %c0_i32 = arith.constant 0 : i32
    %c0_i32_0 = arith.constant 0 : i32
    return %arg0, %c0_i32 : i32, i32
  }
  func.func @transform_2(%arg0: i32, %arg1: i32) -> (i32, i32) {
    %c0_i32 = arith.constant 0 : i32
    %c0_i32_0 = arith.constant 0 : i32
    return %arg0, %c0_i32 : i32, i32
  }
}

</mosaic_0001>

<bundles_post_ra>
// kernel: tpu_custom_call.1
= control target key start
LH: loop header
LB: loop body
LE: loop exit
PB: predicated region body
PF: predicated region fallthrough
CT: control target
= control target key end

     0   :  { %8 = vsyncpa [#allocation5], 0  ;;  %s336_s0 = inlined_call_operand.hbm [shape: f32[8,256], index: 0, kind: input, shape index: {}]   ;;  %s337_s1 = inlined_call_operand.hbm [shape: f32[8,256], index: 1, kind: output, shape index: {0}]   ;;  %s338_s2 = inlined_call_operand.hbm [shape: f32[8,256], index: 2, kind: output, shape index: {1}]  }
   0x1   :  { %9 = vsyncpa [#allocation6], 0 }
   0x2   :  { %10 = vsyncpa [#allocation9], 0  ;;  %s260_s9 = smov [#allocation4]   ;;  %s188_s13 = scalar_lea.hbm %s336_s0, 256 }
   0x3   :  { %s23_s10 = sshll.u32 %s260_s9, 4  ;;  %p189_p0 = scmp.ne.s32.totalorder %s336_s0, %s188_s13  ;;  %s24_s10 = int_to_ptr.vmem [resolvable:$true] %s23_s10 }
   0x4   :  { %p192_p1 = scmp.lt.u32.totalorder %s188_s13, %s336_s0 }
   0x6   :  { %p194_p2 = pnand %p192_p1, %p189_p0 }
   0x8   :  { %197 = shalt.err (!%p194_p2)
}
   0x9   :  { %s198_s18 = scalar_lea.vmem %s24_s10, 256  ;;  %p203_p4 = scmp.lt.s32.totalorder %s24_s10, %s24_s10 }
   0xa   :  { %p199_p3 = scmp.ne.s32.totalorder %s24_s10, %s198_s18  ;;  %p204_p5 = scmp.lt.s32.totalorder %s198_s18, %s198_s18 }
   0xc   :  { %p205_p6 = por %p204_p5, %p203_p4 }
   0xe   :  { %p206_p7 = pnand %p205_p6, %p199_p3 }
  0x10   :  { %209 = shalt.err (!%p206_p7)
}
  0x11   :  { %26 = dma.hbm_to_vmem [thread:$0]  %s336_s0, 256, %s24_s10, [#allocation5]  }
  0x12   :  { %254 = dma.done.wait [#allocation5], 256  }
  0x13   :  { %255 = vsyncadd [#allocation5], 4294967040  ;;  %v37_v0 = vlaneseq  ;;  %v261_v2 = vmov 0.0   ;;  %v262_v3 = vmov -inf   ;;  %v43_v4 = vld [vmem:[#allocation4] sm:$0xff]  ;;  %v44_v5 = vld [vmem:[#allocation4 + $0x8] sm:$0xff] }
  0x14   :  { %v46_v6 = vrot.slane %v43_v4, 4  ;;  %v52_v7 = vrot.slane %v44_v5, 4  ;;  %v263_v8 = vmov 1966171168   ;;  %s264_s0 = smov [#allocation7]   ;;  %s265_s22 = smov [#allocation8]  }
  0x15   :  { %vm293_vm0 = vcmp.lt.s32.totalorder %v37_v0, 256  ;;  %v62_v9 = vunpack.c.l.s4 %v263_v8  ;;  %v65_v19 = vshrl.u32 %v37_v0, 7  ;;  %s157_s21 = sshll.u32 %s264_s0, 4  ;;  %s167_s23 = sshll.u32 %s265_s22, 4  ;;  %s158_s21 = int_to_ptr.vmem [resolvable:$true] %s157_s21  ;;  %s305_s23 = int_to_ptr.vmem [resolvable:$true] %s167_s23 }
  0x16   :  { %42 = vst.msk [vmem:[#allocation3] sm:$0x3] %vm293_vm0, %v261_v2  ;;  %41 = vst.msk [vmem:[#allocation2] sm:$0x3] %vm293_vm0, %v262_v3  ;;  %v84_v10 = vadd.f32 %v46_v6, %v43_v4  ;;  %v90_v11 = vadd.f32 %v52_v7, %v44_v5  ;;  %v47_v12 = vmax.f32 %v43_v4, %v46_v6  ;;  %s210_s24 = scalar_lea.vmem %s158_s21, 256  ;;  %p215_p9 = scmp.lt.s32.totalorder %s158_s21, %s158_s21 }
  0x17   :  { %v53_v13 = vmax.f32 %v44_v5, %v52_v7  ;;  %v63_v18 = vunpack.c.0.s8 %v62_v9  ;;  %v124_v43 = vsub.s32 0, %v65_v19  ;;  %v128_v44 = vsub.s32 1, %v65_v19  ;;  %p211_p8 = scmp.ne.s32.totalorder %s158_s21, %s210_s24  ;;  %p216_p10 = scmp.lt.s32.totalorder %s210_s24, %s210_s24 }
  0x18   :  { %v85_v14 = vrot.slane %v84_v10, 2  ;;  %v91_v15 = vrot.slane %v90_v11, 2  ;;  %v48_v16 = vrot.slane %v47_v12, 2  ;;  %vm134_vm1 = vcmp.eq.s32.totalorder %v65_v19, 0 }
  0x19   :  { %v54_v17 = vrot.slane %v53_v13, 2  ;;  %v66_v28 = vsub.s32 %v63_v18, %v65_v19  ;;  %p217_p11 = por %p216_p10, %p215_p9 }
  0x1a   :  { %v86_v20 = vadd.f32 %v85_v14, %v84_v10  ;;  %v92_v21 = vadd.f32 %v91_v15, %v90_v11  ;;  %v49_v22 = vmax.f32 %v47_v12, %v48_v16 }
  0x1b   :  { %v55_v23 = vmax.f32 %v53_v13, %v54_v17  ;;  %p218_p12 = pnand %p217_p11, %p211_p8 }
  0x1c   :  { %v87_v24 = vrot.slane %v86_v20, 1  ;;  %v93_v25 = vrot.slane %v92_v21, 1  ;;  %v50_v26 = vrot.slane %v49_v22, 1 }
  0x1d   :  { %v56_v27 = vrot.slane %v55_v23, 1  ;;  %v82_v37 = vld [vmem:[#allocation3] sm:$0x3]  ;;  %v45_v38 = vld [vmem:[#allocation2] sm:$0x3] }
  0x1e   :  { %v88_v29 = vadd.f32 %v87_v24, %v86_v20  ;;  %v94_v30 = vadd.f32 %v93_v25, %v92_v21  ;;  %v51_v31 = vmax.f32 %v49_v22, %v50_v26 }
  0x1f   :  { %v57_v32 = vmax.f32 %v55_v23, %v56_v27 }
  0x20   :  { %v97_v33 = vcombine.low %v88_v29, %v94_v30 }
  0x21   :  { %v60_v34 = vcombine.low %v51_v31, %v57_v32 }
  0x22   :  { %v104_v35 = vrot.slane %v97_v33, %v66_v28 }
  0x23   :  { %v67_v36 = vrot.slane %v60_v34, %v66_v28 }
  0x24   :  { %v111_v39 = vrot.slane %v104_v35, %v66_v28 }
  0x25   :  { %v74_v40 = vrot.slane %v67_v36, %v66_v28 }
  0x26   :  { %v113_v41 = vadd.f32 %v111_v39, %v82_v37 }
  0x27   :  { %v76_v42 = vmax.f32 %v45_v38, %v74_v40 }
  0x28   :  { %114 = vst.msk [vmem:[#allocation3] sm:$0x3] %vm293_vm0, %v113_v41 }
  0x29   :  { %81 = vst.msk [vmem:[#allocation2] sm:$0x3] %vm293_vm0, %v76_v42 }
  0x2f   :  { %v135_v46 = vld [vmem:[#allocation3] sm:$0x3] }
  0x30   :  { %v120_v45 = vld [vmem:[#allocation2] sm:$0x3]  ;;  %v140_v49 = vrot.slane %v135_v46, %v124_v43  ;;  %v144_v50 = vrot.slane %v135_v46, %v128_v44 }
  0x31   :  { %v125_v47 = vrot.slane %v120_v45, %v124_v43  ;;  %v129_v48 = vrot.slane %v120_v45, %v128_v44 }
  0x32   :  { %v147_v51 = vsel %vm134_vm1, %v140_v49, 0.0  ;;  %v148_v52 = vsel %vm134_vm1, %v144_v50, 0.0 }
  0x33   :  { %132 = vst [vmem:[#allocation7] sm:$0xff] %v125_v47  ;;  %133 = vst [vmem:[#allocation7 + $0x8] sm:$0xff] %v129_v48 }
  0x34   :  { %149 = vst [vmem:[#allocation8] sm:$0xff] %v147_v51  ;;  %150 = vst [vmem:[#allocation8 + $0x8] sm:$0xff] %v148_v52 }
  0x35   :  { %221 = shalt.err (!%p218_p12)
}
  0x36   :  { %s222_s27 = scalar_lea.hbm %s337_s1, 256 }
  0x37   :  { %p223_p13 = scmp.ne.s32.totalorder %s337_s1, %s222_s27  ;;  %p226_p0 = scmp.lt.u32.totalorder %s222_s27, %s337_s1 }
  0x39   :  { %p228_p1 = pnand %p226_p0, %p223_p13 }
  0x3b   :  { %231 = shalt.err (!%p228_p1)
}
  0x3c   :  { %160 = dma.vmem_to_hbm [thread:$0]  %s158_s21, 256, %s337_s1, [#allocation6]  }
  0x3d   :  { %s232_s6 = scalar_lea.vmem %s305_s23, 256  ;;  %p237_p3 = scmp.lt.s32.totalorder %s305_s23, %s305_s23 }
  0x3e   :  { %p233_p2 = scmp.ne.s32.totalorder %s305_s23, %s232_s6  ;;  %p238_p4 = scmp.lt.s32.totalorder %s232_s6, %s232_s6 }
  0x40   :  { %p239_p5 = por %p238_p4, %p237_p3 }
  0x42   :  { %p240_p6 = pnand %p239_p5, %p233_p2 }
  0x44   :  { %243 = shalt.err (!%p240_p6)
}
  0x45   :  { %s244_s9 = scalar_lea.hbm %s338_s2, 256 }
  0x46   :  { %p245_p7 = scmp.ne.s32.totalorder %s338_s2, %s244_s9  ;;  %p248_p8 = scmp.lt.u32.totalorder %s244_s9, %s338_s2 }
  0x48   :  { %p250_p9 = pnand %p248_p8, %p245_p7 }
  0x4a   :  { %253 = shalt.err (!%p250_p9)
}
  0x4b   :  { %170 = dma.vmem_to_hbm [thread:$0]  %s305_s23, 256, %s338_s2, [#allocation9]  }
  0x4c   :  { %256 = dma.done.wait [#allocation6], 256  }
  0x4d   :  { %257 = vsyncadd [#allocation6], 4294967040 }
  0x4e   :  { %258 = dma.done.wait [#allocation9], 256  }
  0x4f   :  { %259 = vsyncadd [#allocation9], 4294967040 }
  0x50   :  { %177 = vsyncpa [#allocation5], 1 }
  0x51   :  { %178 = vsyncpa [#allocation6], 1 }
  0x52   :  { %179 = vsyncpa [#allocation9], 1 }

</bundles_post_ra>
